<compile_context>
chip_gen: v7x
topology: tpu7x:2x2x1
jax: 0.10.0
libtpu: 0.0.40
codegen_flags: <defaults>
</compile_context>

<pallas_src>
import functools

import jax
import jax.numpy as jnp
import numpy as np
from jax.experimental import pallas as pl
from jax.experimental.pallas import tpu as pltpu


# ---------------------------------------------------------------------------
# Pallas kernel: fused Linear (+bias) (+ReLU)
# ---------------------------------------------------------------------------
def _fc_kernel(x_ref, w_ref, b_ref, o_ref, acc_ref, *, relu):
    # x_ref: (tm, tk)   w_ref: (tk, tn)   b_ref: (1, tn)
    # o_ref: (tm, tn)   acc_ref: (tm, tn) f32 scratch (lives across the K axis)
    k = pl.program_id(2)

    @pl.when(k == 0)
    def _():
        acc_ref[...] = jnp.zeros_like(acc_ref)

    acc_ref[...] += jnp.dot(x_ref[...], w_ref[...],
                            preferred_element_type=jnp.float32)

    @pl.when(k == pl.num_programs(2) - 1)
    def _():
        out = acc_ref[...] + b_ref[...].astype(jnp.float32)
        if relu:
            out = jnp.maximum(out, 0.0)
        o_ref[...] = out.astype(o_ref.dtype)


# ---------------------------------------------------------------------------
# Wrapper: tiling, padding, BlockSpecs
# ---------------------------------------------------------------------------
def _round_up(x, m):
    return ((x + m - 1) // m) * m


def fc_forward(x, w, b, *, relu=True, block_m=256, block_n=256, block_k=512):
    """y = relu(x @ w + b).  w is (in_features, out_features) (= PyTorch W.T)."""
    orig_lead = x.shape[:-1]
    K = x.shape[-1]
    M = int(np.prod(orig_lead)) if orig_lead else 1
    N = w.shape[1]
    x2 = x.reshape(M, K)

    # Tile sizes: respect (8, 128) layout, never exceed the (padded) problem.
    tm = min(block_m, _round_up(M, 8))
    tn = min(block_n, _round_up(N, 128))
    tk = min(block_k, _round_up(K, 128))
    Mp, Np, Kp = _round_up(M, tm), _round_up(N, tn), _round_up(K, tk)

    # Zero-pad only when required (zeros in K contribute nothing to the dot).
    if (Mp, Kp) != (M, K):
        x2 = jnp.pad(x2, ((0, Mp - M), (0, Kp - K)))
    if (Kp, Np) != (K, N):
        w = jnp.pad(w, ((0, Kp - K), (0, Np - N)))
    b2 = (jnp.pad(b, (0, Np - N)) if Np != N else b).reshape(1, Np)

    grid = (Mp // tm, Np // tn, Kp // tk)

    out = pl.pallas_call(
        functools.partial(_fc_kernel, relu=relu),
        out_shape=jax.ShapeDtypeStruct((Mp, Np), x.dtype),
        grid=grid,
        in_specs=[
            pl.BlockSpec((tm, tk), lambda i, j, k: (i, k)),
            pl.BlockSpec((tk, tn), lambda i, j, k: (k, j)),
            pl.BlockSpec((1, tn), lambda i, j, k: (0, j)),
        ],
        out_specs=pl.BlockSpec((tm, tn), lambda i, j, k: (i, j)),
        scratch_shapes=[pltpu.VMEM((tm, tn), jnp.float32)],
        compiler_params=pltpu.CompilerParams(
            dimension_semantics=("parallel", "parallel", "arbitrary")),
    )(x2, w, b2)

    out = out[:M, :N]
    return out.reshape(orig_lead + (N,))


# ---------------------------------------------------------------------------
# Pure-JAX reference (correctness check only)
# ---------------------------------------------------------------------------
def fc_reference(x, w, b, relu=True):
    y = jnp.einsum("...k,kn->...n", x.astype(jnp.float32),
                   w.astype(jnp.float32)) + b.astype(jnp.float32)
    if relu:
        y = jnp.maximum(y, 0.0)
    return y


# ---------------------------------------------------------------------------
if __name__ == "__main__":
    key = jax.random.PRNGKey(0)
    k_x, k_w, k_b = jax.random.split(key, 3)

    # Small shapes consistent with FC: x is (batch, seq, in_features),
    # Linear maps the last dim in_features -> out_features.
    batch, seq, in_features, out_features = 2, 8, 32, 64
    x = jax.random.normal(k_x, (batch, seq, in_features), jnp.float32)
    # Weight stored as (in, out) == PyTorch Linear weight transposed.
    w = jax.random.normal(k_w, (in_features, out_features), jnp.float32) * 0.1
    b = jax.random.normal(k_b, (out_features,), jnp.float32) * 0.1

    fwd = jax.jit(functools.partial(fc_forward, relu=True))
    out = jax.block_until_ready(fwd(x, w, b))
    assert out.shape == (batch, seq, out_features), out.shape

    ref = jax.block_until_ready(fc_reference(x, w, b, relu=True))
    np.testing.assert_allclose(np.asarray(out), np.asarray(ref),
                               rtol=1e-5, atol=1e-5)

    # relu=False path (module's `relu=False` constructor arg).
    fwd_nr = jax.jit(functools.partial(fc_forward, relu=False))
    out_nr = jax.block_until_ready(fwd_nr(x, w, b))
    ref_nr = jax.block_until_ready(fc_reference(x, w, b, relu=False))
    np.testing.assert_allclose(np.asarray(out_nr), np.asarray(ref_nr),
                               rtol=1e-5, atol=1e-5)

    # bf16 fast path: bf16 inputs/weights, f32 accumulation inside the kernel.
    out_bf16 = jax.block_until_ready(
        fwd(x.astype(jnp.bfloat16), w.astype(jnp.bfloat16),
            b.astype(jnp.bfloat16)))
    np.testing.assert_allclose(np.asarray(out_bf16, dtype=np.float32),
                               np.asarray(ref), rtol=5e-2, atol=5e-2)

    print("KERNEL_OK")
</pallas_src>

<mosaic_0001>
module attributes {stable_mosaic.version = 11 : i64} {
  func.func @_fc_kernel(%arg0: i32, %arg1: i32, %arg2: i32, %arg3: memref<16x128xf32, #tpu.memory_space<vmem>>, %arg4: memref<128x128xf32, #tpu.memory_space<vmem>>, %arg5: memref<1x128xf32, #tpu.memory_space<vmem>>, %arg6: memref<16x128xf32, #tpu.memory_space<vmem>>, %arg7: memref<16x128xf32, #tpu.memory_space<vmem>>) attributes {dimension_semantics = [#tpu.dimension_semantics<parallel>, #tpu.dimension_semantics<parallel>, #tpu.dimension_semantics<arbitrary>], iteration_bounds = array<i64: 1, 1, 1>, scalar_prefetch = 0 : i64, scratch_operands = 1 : i64, tpu.core_type = #tpu.core_type<tc>, window_params = [{transform_indices = @transform_0, window_bounds = array<i64: 16, 128>}, {transform_indices = @transform_1, window_bounds = array<i64: 128, 128>}, {transform_indices = @transform_2, window_bounds = array<i64: 1, 128>}, {transform_indices = @transform_3, window_bounds = array<i64: 16, 128>}]} {
    %c0_i32 = arith.constant 0 : i32
    %0 = arith.cmpi eq, %arg2, %c0_i32 : i32
    %1 = arith.extui %0 : i1 to i32
    %c0_i32_0 = arith.constant 0 : i32
    %2 = arith.cmpi ne, %1, %c0_i32_0 : i32
    scf.if %2 {
      %cst_10 = arith.constant 0.000000e+00 : f32
      %12 = vector.broadcast %cst_10 : f32 to vector<16x128xf32>
      %c0_11 = arith.constant 0 : index
      %c0_12 = arith.constant 0 : index
      %13 = vector.load %arg7[%c0_11, %c0_12] : memref<16x128xf32, #tpu.memory_space<vmem>>, vector<16x128xf32>
      tpu.vector_store %arg7[%c0_11, %c0_12], %12 {strides = array<i32>} : memref<16x128xf32, #tpu.memory_space<vmem>>, vector<16x128xf32>,
    } else {
    }
    %c0 = arith.constant 0 : index
    %c0_1 = arith.constant 0 : index
    %3 = vector.load %arg7[%c0, %c0_1] : memref<16x128xf32, #tpu.memory_space<vmem>>, vector<16x128xf32>
    %c0_2 = arith.constant 0 : index
    %c0_3 = arith.constant 0 : index
    %4 = vector.load %arg3[%c0_2, %c0_3] : memref<16x128xf32, #tpu.memory_space<vmem>>, vector<16x128xf32>
    %c0_4 = arith.constant 0 : index
    %c0_5 = arith.constant 0 : index
    %5 = vector.load %arg4[%c0_4, %c0_5] : memref<128x128xf32, #tpu.memory_space<vmem>>, vector<128x128xf32>
    %cst = arith.constant dense<0.000000e+00> : vector<16x128xf32>
    %6 = tpu.matmul %4, %5, %cst {dimension_numbers = #tpu.dot_dimension_numbers<[1], [0], [0], [1], [0, 0, 1, 1], [], []>} : vector<16x128xf32>, vector<128x128xf32>, vector<16x128xf32> -> vector<16x128xf32>
    %7 = arith.addf %3, %6 : vector<16x128xf32>
    %c0_6 = arith.constant 0 : index
    %c0_7 = arith.constant 0 : index
    %8 = vector.load %arg7[%c0_6, %c0_7] : memref<16x128xf32, #tpu.memory_space<vmem>>, vector<16x128xf32>
    tpu.vector_store %arg7[%c0_6, %c0_7], %7 {strides = array<i32>} : memref<16x128xf32, #tpu.memory_space<vmem>>, vector<16x128xf32>,
    %c0_i32_8 = arith.constant 0 : i32
    %9 = arith.cmpi eq, %arg2, %c0_i32_8 : i32
    %10 = arith.extui %9 : i1 to i32
    %c0_i32_9 = arith.constant 0 : i32
    %11 = arith.cmpi ne, %10, %c0_i32_9 : i32
    scf.if %11 {
      %c0_10 = arith.constant 0 : index
      %c0_11 = arith.constant 0 : index
      %12 = vector.load %arg7[%c0_10, %c0_11] : memref<16x128xf32, #tpu.memory_space<vmem>>, vector<16x128xf32>
      %c0_12 = arith.constant 0 : index
      %c0_13 = arith.constant 0 : index
      %13 = vector.load %arg5[%c0_12, %c0_13] : memref<1x128xf32, #tpu.memory_space<vmem>>, vector<1x128xf32>
      %14 = vector.broadcast %13 : vector<1x128xf32> to vector<16x128xf32>
      %15 = arith.addf %12, %14 : vector<16x128xf32>
      %cst_14 = arith.constant 0.000000e+00 : f32
      %16 = vector.broadcast %cst_14 : f32 to vector<16x128xf32>
      %17 = arith.maximumf %15, %16 : vector<16x128xf32>
      %c0_15 = arith.constant 0 : index
      %c0_16 = arith.constant 0 : index
      %18 = vector.load %arg6[%c0_15, %c0_16] : memref<16x128xf32, #tpu.memory_space<vmem>>, vector<16x128xf32>
      tpu.vector_store %arg6[%c0_15, %c0_16], %17 {strides = array<i32>} : memref<16x128xf32, #tpu.memory_space<vmem>>, vector<16x128xf32>,
    } else {
    }
    return
  }
  func.func @transform_0(%arg0: i32, %arg1: i32, %arg2: i32) -> (i32, i32) {
    %c0_i32 = arith.constant 0 : i32
    return %arg0, %arg2 : i32, i32
  }
  func.func @transform_1(%arg0: i32, %arg1: i32, %arg2: i32) -> (i32, i32) {
    %c0_i32 = arith.constant 0 : i32
    return %arg2, %arg1 : i32, i32
  }
  func.func @transform_2(%arg0: i32, %arg1: i32, %arg2: i32) -> (i32, i32) {
    %c0_i32 = arith.constant 0 : i32
    %c0_i32_0 = arith.constant 0 : i32
    return %c0_i32, %arg1 : i32, i32
  }
  func.func @transform_3(%arg0: i32, %arg1: i32, %arg2: i32) -> (i32, i32) {
    %c0_i32 = arith.constant 0 : i32
    return %arg0, %arg1 : i32, i32
  }
}

</mosaic_0001>

<bundles_post_ra>
// kernel: fc_forward.1
= control target key start
LH: loop header
LB: loop body
LE: loop exit
PB: predicated region body
PF: predicated region fallthrough
CT: control target
= control target key end

     0   :  { %s310_s1 = inlined_call_operand.vmem [shape: f32[128,128], index: 1, kind: input, shape index: {}]   ;;  %s311_s0 = inlined_call_operand.vmem [shape: f32[16,128], index: 0, kind: input, shape index: {}]   ;;  %s312_s2 = inlined_call_operand.vmem [shape: f32[1,128], index: 2, kind: input, shape index: {}]   ;;  %s313_s3 = inlined_call_operand.vmem [shape: f32[16,128], index: 3, kind: output, shape index: {}]  }
   0x1   :  { %v24_v0 = vld [vmem:[%s310_s1] sm:$0xff]  ;;  %v25_v1 = vld [vmem:[%s310_s1 + $0x8] sm:$0xff]  ;;  %v26_v2 = vld [vmem:[%s310_s1 + $0x10] sm:$0xff] }
   0x2   :  { %v195_v3 = vpack.c.bf16 %v25_v1, %v24_v0  ;;  %v27_v4 = vld [vmem:[%s310_s1 + $0x18] sm:$0xff]  ;;  %v28_v6 = vld [vmem:[%s310_s1 + $0x20] sm:$0xff]  ;;  %v29_v7 = vld [vmem:[%s310_s1 + $0x28] sm:$0xff] }
   0x3   :  { %v199_v5 = vpack.c.bf16 %v27_v4, %v26_v2  ;;  %v203_v8 = vpack.c.bf16 %v29_v7, %v28_v6  ;;  %v22_v9 = vld [vmem:[%s311_s0] sm:$0xff]  ;;  %v30_v10 = vld [vmem:[%s310_s1 + $0x30] sm:$0xff]  ;;  %v31_v11 = vld [vmem:[%s310_s1 + $0x38] sm:$0xff] }
   0x4   :  { %196 = vmatprep.subr.bf16.mxu0 %v195_v3  ;;  %192 = vmatprep.mubr.f32.mxu0 %v22_v9  ;;  %v207_v12 = vpack.c.bf16 %v31_v11, %v30_v10  ;;  %v32_v13 = vld [vmem:[%s310_s1 + $0x40] sm:$0xff]  ;;  %v33_v14 = vld [vmem:[%s310_s1 + $0x48] sm:$0xff]  ;;  %v34_v16 = vld [vmem:[%s310_s1 + $0x50] sm:$0xff] }
   0x5   :  { %198 = vmatpush3.bf16.msra.mxu0 %v195_v3  ;;  %v211_v15 = vpack.c.bf16 %v33_v14, %v32_v13  ;;  %v35_v17 = vld [vmem:[%s310_s1 + $0x58] sm:$0xff]  ;;  %v36_v19 = vld [vmem:[%s310_s1 + $0x60] sm:$0xff]  ;;  %v37_v20 = vld [vmem:[%s310_s1 + $0x68] sm:$0xff] }
   0x6   :  { %200 = vmatprep.subr.bf16.mxu0 %v199_v5  ;;  %v215_v18 = vpack.c.bf16 %v35_v17, %v34_v16  ;;  %v219_v21 = vpack.c.bf16 %v37_v20, %v36_v19  ;;  %v38_v22 = vld [vmem:[%s310_s1 + $0x70] sm:$0xff]  ;;  %v39_v23 = vld [vmem:[%s310_s1 + $0x78] sm:$0xff]  ;;  %v23_v25 = vld [vmem:[%s311_s0 + $0x8] sm:$0xff] }
   0x7   :  { %v223_v24 = vpack.c.bf16 %v39_v23, %v38_v22  ;;  %v141_v26 = vld [vmem:[%s312_s2] ss:$0 sm:$0xff] }
   0x9   :  { %202 = vmatpush3.bf16.msra.mxu0 %v199_v5 }
   0xa   :  { %204 = vmatprep.subr.bf16.mxu0 %v203_v8 }
   0xd   :  { %206 = vmatpush3.bf16.msra.mxu0 %v203_v8 }
   0xe   :  { %208 = vmatprep.subr.bf16.mxu0 %v207_v12 }
  0x11   :  { %210 = vmatpush3.bf16.msra.mxu0 %v207_v12 }
  0x12   :  { %212 = vmatprep.subr.bf16.mxu0 %v211_v15 }
  0x15   :  { %214 = vmatpush3.bf16.msra.mxu0 %v211_v15 }
  0x16   :  { %216 = vmatprep.subr.bf16.mxu0 %v215_v18 }
  0x19   :  { %218 = vmatpush3.bf16.msra.mxu0 %v215_v18 }
  0x1a   :  { %220 = vmatprep.subr.bf16.mxu0 %v219_v21 }
  0x1d   :  { %222 = vmatpush3.bf16.msra.mxu0 %v219_v21 }
  0x1e   :  { %224 = vmatprep.subr.bf16.mxu0 %v223_v24 }
  0x21   :  { %226 = vmatpush3.bf16.msra.mxu0 %v223_v24 }
  0x24   :  { %193 = vmatmul.mubr.f32.vlgmr.msra.gmra.mrb[0].mxu0 %v23_v25 }
  0xf7   :  { %v194_v27 = vpop.f32.mrb[0].mxu0 }
  0xf8   :  { %v132_v28 = vadd.f32 %v194_v27, %v141_v26  ;;  %v106_v29 = vpop.f32.mrb[1].mxu0 }
  0xf9   :  { %v131_v30 = vadd.f32 %v141_v26, %v106_v29 }
  0xfa   :  { %v134_v31 = vmax.f32 %v132_v28, 0.0 }
  0xfb   :  { %v133_v32 = vmax.f32 %v131_v30, 0.0 }
  0xfc   :  { %136 = vst [vmem:[%s313_s3 + $0x8] sm:$0xff] %v134_v31 }
  0xfd   :  { %135 = vst [vmem:[%s313_s3] sm:$0xff] %v133_v32 }

</bundles_post_ra>
